<compile_context>
chip_gen: v7x
topology: tpu7x:2x2x1
jax: 0.10.0
libtpu: 0.0.40
codegen_flags: <defaults>
</compile_context>

<pallas_src>
import functools

import jax
import jax.numpy as jnp
from jax.experimental import pallas as pl
from jax.experimental.pallas import tpu as pltpu


_LANE = 128      # TPU lane width (last-dim tile)
_SUBLANE = 16    # bf16 sublane packing (2nd-minor tile); also fine for f32
_TB_MAX = 2048   # batch tile upper bound (amortizes per-step overhead on v6e/v7x)


def _round_up(x, m):
    return ((x + m - 1) // m) * m


def _pick_tb(B, H, Cp, tb_max):
    """Pick the batch tile: big enough to amortize per-step overhead, small
    enough that the double-buffered f32 emb tile + bf16 logits tile + f32
    epilogue intermediates stay well under the 48 MiB VMEM limit, and (for
    B > 16) giving at least 2 grid steps so v7x megacore keeps both TCs busy.
    """
    bytes_per_row = 4 * H + 6 * Cp                       # emb f32 + logits bf16 + f32 scratch
    cap = max(_SUBLANE, ((12 << 20) // bytes_per_row) // _SUBLANE * _SUBLANE)
    cap = min(cap, tb_max)
    if B <= _SUBLANE:
        return _SUBLANE
    want = _round_up((B + 1) // 2, _SUBLANE)             # aim for >= 2 grid steps
    return min(cap, want)


def _supervise_kernel(emb_ref, w_ref, b_ref, lab_ref, loss_ref, logits_ref):
    """One batch tile: linear head + per-sample CE + softmax.

    emb_ref:    [TB, H]  f32    embedding tile (streamed; cast to bf16 here)
    w_ref:      [H, Cp]  bf16   head weight (VMEM-resident across the grid)
    b_ref:      [1, Cp]  f32    head bias; padded classes hold -1e30
    lab_ref:    [TB, 1]  int32  labels (p_rel)
    loss_ref:   [TB, 1]  f32    per-sample CE (reduction='none')
    logits_ref: [TB, Cp] bf16   softmax(out, -1); padded classes are exactly 0
    """
    # In-kernel bf16 cast (VPU, hidden under DMA) -> MXU matmul -> f32 + bias.
    emb = emb_ref[...].astype(jnp.bfloat16)
    out = jnp.dot(emb, w_ref[...],
                  preferred_element_type=jnp.float32) + b_ref[...]

    # Numerically stable softmax / log-sum-exp pieces (f32 throughout; v5e has
    # no bf16 VPU/EUP path).
    m = jnp.max(out, axis=-1, keepdims=True)               # [TB, 1]   (XLU)
    e = jnp.exp(out - m)                                    # [TB, Cp]  (EUP)
    denom = jnp.sum(e, axis=-1, keepdims=True)              # [TB, 1]   (XLU)
    lse = m + jnp.log(denom)                                 # [TB, 1]

    # Label-logit gather via a masked reduce (no dynamic gather on TPU).
    cls_idx = jax.lax.broadcasted_iota(jnp.int32, out.shape, 1)        # [TB, Cp]
    label_logit = jnp.sum(jnp.where(cls_idx == lab_ref[...], out, 0.0),
                          axis=-1, keepdims=True)                      # [TB, 1]

    # CrossEntropyLoss(reduction='none').
    loss_ref[...] = lse - label_logit
    # softmax(out, -1): exact divide (HBM-bound kernel -> cost invisible),
    # stored in bf16 to halve the padded-class writeback.
    logits_ref[...] = (e / denom).astype(logits_ref.dtype)


@functools.partial(jax.jit, static_argnames=("tb_max",))
def supervise_learner_forward(embd0, weight_t, bias, labels, *, tb_max=_TB_MAX):
    """Forward of `surpervise_learner`.

    Args:
      embd0:    [B, H] float32 embeddings (stand-in for get_embeddings_PURE).
      weight_t: [H, C] float32 linear-head weight (PyTorch weight transposed).
      bias:     [C]    float32 linear-head bias.
      labels:   [B]    int32 class labels (p_rel).
    Returns:
      (mean_loss scalar, per_sample_loss [B], softmax_logits [B, C] f32)
    """
    B, H = embd0.shape
    C = weight_t.shape[1]
    f32, bf16 = jnp.float32, jnp.bfloat16

    # Pad the class axis to a full 128-lane tile (lane-dense logits stores);
    # padded classes get a -1e30 bias so their exp() underflows to exactly 0.
    Cp = _round_up(max(C, _LANE), _LANE)

    TB = _pick_tb(B, H, Cp, tb_max)
    B_pad = _round_up(B, TB)
    n_tiles = B_pad // TB

    # Embeddings stream through untouched (no pad/cast pre-pass over the
    # dominant HBM stream).  Only when the whole batch is smaller than one
    # tile do we pad — a negligible (<16 rows) copy.  For larger ragged
    # batches the last tile is a partial block: out-of-bounds rows read
    # unspecified data, land in output rows >= B, and are sliced off below.
    emb = embd0
    if B < TB:
        emb = jnp.zeros((TB, H), embd0.dtype).at[:B].set(embd0)

    # Tiny wrapper-side plumbing: resident head weight (bf16), bias (f32 with
    # -1e30 in padded classes), padded labels.
    w = jnp.zeros((H, Cp), bf16).at[:, :C].set(weight_t.astype(bf16))
    b2 = jnp.full((1, Cp), -1e30, f32).at[0, :C].set(bias.astype(f32))
    lab = jnp.zeros((B_pad, 1), jnp.int32).at[:B, 0].set(labels.astype(jnp.int32))

    per_loss, logits = pl.pallas_call(
        _supervise_kernel,
        out_shape=(
            jax.ShapeDtypeStruct((B_pad, 1), f32),     # per-sample CE
            jax.ShapeDtypeStruct((B_pad, Cp), bf16),   # softmax logits (bf16 writeback)
        ),
        grid=(n_tiles,),
        in_specs=[
            pl.BlockSpec((TB, H), lambda i: (i, 0)),   # embeddings: streamed
            pl.BlockSpec((H, Cp), lambda i: (0, 0)),   # weight: VMEM-resident
            pl.BlockSpec((1, Cp), lambda i: (0, 0)),   # bias:   VMEM-resident
            pl.BlockSpec((TB, 1), lambda i: (i, 0)),   # labels: streamed
        ],
        out_specs=(
            pl.BlockSpec((TB, 1), lambda i: (i, 0)),
            pl.BlockSpec((TB, Cp), lambda i: (i, 0)),
        ),
        compiler_params=pltpu.CompilerParams(
            dimension_semantics=("parallel",),          # v7x megacore sharding
            vmem_limit_bytes=48 * 1024 * 1024,          # explicit; < 64 MiB (v7x)
        ),
    )(emb, w, b2, lab)

    # Drop padded rows / padded classes; mean reduced wrapper-side.
    per_loss = per_loss[:B, 0]
    logits = logits[:B, :C].astype(f32)
    mean_loss = jnp.mean(per_loss)
    return mean_loss, per_loss, logits


if __name__ == "__main__":
    # Small, deterministic synthetic setup consistent with the module:
    #   batch B=8 "sentences", hidden H=32 (BERT embedding dim stand-in),
    #   C=4 relation classes for the `out` linear head.
    B, H, C = 8, 32, 4
    key = jax.random.PRNGKey(0)
    k_emb, k_w, k_b, k_lab = jax.random.split(key, 4)

    embd0 = jax.random.normal(k_emb, (B, H), dtype=jnp.float32)
    # PyTorch nn.Linear(H, C) weight is [C, H]; store its transpose [H, C].
    weight_t = jax.random.normal(k_w, (H, C), dtype=jnp.float32) * 0.1
    bias = jax.random.normal(k_b, (C,), dtype=jnp.float32) * 0.1
    labels = jax.random.randint(k_lab, (B,), 0, C, dtype=jnp.int32)

    mean_loss, per_loss, logits = supervise_learner_forward(
        embd0, weight_t, bias, labels)
    jax.block_until_ready((mean_loss, per_loss, logits))

    # Pure-JAX reference with the same bf16 matmul rounding as the kernel.
    out_ref = jnp.dot(embd0.astype(jnp.bfloat16), weight_t.astype(jnp.bfloat16),
                      preferred_element_type=jnp.float32) + bias[None, :]
    lse_ref = jax.nn.logsumexp(out_ref, axis=-1)
    ce_ref = lse_ref - out_ref[jnp.arange(B), labels]
    logits_ref = jax.nn.softmax(out_ref, axis=-1)

    assert jnp.allclose(per_loss, ce_ref, atol=2e-3, rtol=2e-3), "per-sample CE mismatch"
    assert jnp.allclose(mean_loss, jnp.mean(ce_ref), atol=2e-3, rtol=2e-3), "mean loss mismatch"
    # Logits are stored in bf16 -> ~0.4% relative rounding on top of the matmul.
    assert jnp.allclose(logits, logits_ref, atol=1e-2, rtol=2e-2), "softmax mismatch"

    print("KERNEL_OK")
</pallas_src>

<mosaic_0001>
module attributes {stable_mosaic.version = 11 : i64} {
  func.func @_supervise_kernel(%arg0: i32, %arg1: memref<16x32xf32, #tpu.memory_space<vmem>>, %arg2: memref<32x128xbf16, #tpu.memory_space<vmem>>, %arg3: memref<1x128xf32, #tpu.memory_space<vmem>>, %arg4: memref<16x1xi32, #tpu.memory_space<vmem>>, %arg5: memref<16x1xf32, #tpu.memory_space<vmem>>, %arg6: memref<16x128xbf16, #tpu.memory_space<vmem>>) attributes {dimension_semantics = [#tpu.dimension_semantics<parallel>], iteration_bounds = array<i64: 1>, scalar_prefetch = 0 : i64, scratch_operands = 0 : i64, tpu.core_type = #tpu.core_type<tc>, window_params = [{transform_indices = @transform_0, window_bounds = array<i64: 16, 32>}, {pipeline_mode = #tpu.pipeline_mode<synchronous>, transform_indices = @transform_1, window_bounds = array<i64: 32, 128>}, {pipeline_mode = #tpu.pipeline_mode<synchronous>, transform_indices = @transform_2, window_bounds = array<i64: 1, 128>}, {transform_indices = @transform_3, window_bounds = array<i64: 16, 1>}, {transform_indices = @transform_4, window_bounds = array<i64: 16, 1>}, {transform_indices = @transform_5, window_bounds = array<i64: 16, 128>}]} {
    %c0 = arith.constant 0 : index
    %c0_0 = arith.constant 0 : index
    %0 = vector.load %arg1[%c0, %c0_0] : memref<16x32xf32, #tpu.memory_space<vmem>>, vector<16x32xf32>
    %1 = arith.truncf %0 : vector<16x32xf32> to vector<16x32xbf16>
    %c0_1 = arith.constant 0 : index
    %c0_2 = arith.constant 0 : index
    %2 = vector.load %arg2[%c0_1, %c0_2] : memref<32x128xbf16, #tpu.memory_space<vmem>>, vector<32x128xbf16>
    %cst = arith.constant dense<0.000000e+00> : vector<16x128xf32>
    %3 = tpu.matmul %1, %2, %cst {dimension_numbers = #tpu.dot_dimension_numbers<[1], [0], [0], [1], [0, 0, 1, 1], [], []>} : vector<16x32xbf16>, vector<32x128xbf16>, vector<16x128xf32> -> vector<16x128xf32>
    %c0_3 = arith.constant 0 : index
    %c0_4 = arith.constant 0 : index
    %4 = vector.load %arg3[%c0_3, %c0_4] : memref<1x128xf32, #tpu.memory_space<vmem>>, vector<1x128xf32>
    %5 = vector.broadcast %4 : vector<1x128xf32> to vector<16x128xf32>
    %6 = arith.addf %3, %5 : vector<16x128xf32>
    %cst_5 = arith.constant dense<0xFF800000> : vector<16xf32>
    %7 = vector.multi_reduction <maximumf>, %6, %cst_5 [1] : vector<16x128xf32> to vector<16xf32>
    %8 = vector.shape_cast %7 : vector<16xf32> to vector<16x1xf32>
    %9 = vector.broadcast %8 : vector<16x1xf32> to vector<16x128xf32>
    %10 = arith.subf %6, %9 : vector<16x128xf32>
    %11 = math.exp %10 : vector<16x128xf32>
    %cst_6 = arith.constant dense<0.000000e+00> : vector<16xf32>
    %12 = vector.multi_reduction <add>, %11, %cst_6 [1] : vector<16x128xf32> to vector<16xf32>
    %13 = vector.shape_cast %12 : vector<16xf32> to vector<16x1xf32>
    %14 = math.log %13 : vector<16x1xf32>
    %15 = arith.addf %8, %14 : vector<16x1xf32>
    %16 = tpu.iota {dimensions = array<i32: 1>} : vector<16x128xi32>
    %c0_7 = arith.constant 0 : index
    %c0_8 = arith.constant 0 : index
    %17 = vector.load %arg4[%c0_7, %c0_8] : memref<16x1xi32, #tpu.memory_space<vmem>>, vector<16x1xi32>
    %18 = vector.broadcast %17 : vector<16x1xi32> to vector<16x128xi32>
    %19 = arith.cmpi eq, %16, %18 : vector<16x128xi32>
    %cst_9 = arith.constant 0.000000e+00 : f32
    %20 = vector.broadcast %cst_9 : f32 to vector<16x128xf32>
    %21 = arith.select %19, %6, %20 : vector<16x128xi1>, vector<16x128xf32>
    %cst_10 = arith.constant dense<0.000000e+00> : vector<16xf32>
    %22 = vector.multi_reduction <add>, %21, %cst_10 [1] : vector<16x128xf32> to vector<16xf32>
    %23 = vector.shape_cast %22 : vector<16xf32> to vector<16x1xf32>
    %24 = arith.subf %15, %23 : vector<16x1xf32>
    %c0_11 = arith.constant 0 : index
    %c0_12 = arith.constant 0 : index
    %25 = vector.load %arg5[%c0_11, %c0_12] : memref<16x1xf32, #tpu.memory_space<vmem>>, vector<16x1xf32>
    tpu.vector_store %arg5[%c0_11, %c0_12], %24 {strides = array<i32>} : memref<16x1xf32, #tpu.memory_space<vmem>>, vector<16x1xf32>,
    %26 = vector.broadcast %13 : vector<16x1xf32> to vector<16x128xf32>
    %27 = arith.divf %11, %26 : vector<16x128xf32>
    %28 = arith.truncf %27 : vector<16x128xf32> to vector<16x128xbf16>
    %c0_13 = arith.constant 0 : index
    %c0_14 = arith.constant 0 : index
    %29 = vector.load %arg6[%c0_13, %c0_14] : memref<16x128xbf16, #tpu.memory_space<vmem>>, vector<16x128xbf16>
    tpu.vector_store %arg6[%c0_13, %c0_14], %28 {strides = array<i32>} : memref<16x128xbf16, #tpu.memory_space<vmem>>, vector<16x128xbf16>,
    return
  }
  func.func @transform_0(%arg0: i32) -> (i32, i32) {
    %c0_i32 = arith.constant 0 : i32
    %c0_i32_0 = arith.constant 0 : i32
    return %arg0, %c0_i32 : i32, i32
  }
  func.func @transform_1(%arg0: i32) -> (i32, i32) {
    %c0_i32 = arith.constant 0 : i32
    %c0_i32_0 = arith.constant 0 : i32
    %c0_i32_1 = arith.constant 0 : i32
    return %c0_i32, %c0_i32_0 : i32, i32
  }
  func.func @transform_2(%arg0: i32) -> (i32, i32) {
    %c0_i32 = arith.constant 0 : i32
    %c0_i32_0 = arith.constant 0 : i32
    %c0_i32_1 = arith.constant 0 : i32
    return %c0_i32, %c0_i32_0 : i32, i32
  }
  func.func @transform_3(%arg0: i32) -> (i32, i32) {
    %c0_i32 = arith.constant 0 : i32
    %c0_i32_0 = arith.constant 0 : i32
    return %arg0, %c0_i32 : i32, i32
  }
  func.func @transform_4(%arg0: i32) -> (i32, i32) {
    %c0_i32 = arith.constant 0 : i32
    %c0_i32_0 = arith.constant 0 : i32
    return %arg0, %c0_i32 : i32, i32
  }
  func.func @transform_5(%arg0: i32) -> (i32, i32) {
    %c0_i32 = arith.constant 0 : i32
    %c0_i32_0 = arith.constant 0 : i32
    return %arg0, %c0_i32 : i32, i32
  }
}

</mosaic_0001>

<bundles_post_ra>
// kernel: supervise_learner_forward.1
= control target key start
LH: loop header
LB: loop body
LE: loop exit
PB: predicated region body
PF: predicated region fallthrough
CT: control target
= control target key end

     0   :  { %v199_v0 = vmov 0.0   ;;  %vm200_vm0 = vmmov 0   ;;  %v201_v3 = vmov 0   ;;  %vm46_vm1 = vcmask 261120   ;;  %s262_s1 = inlined_call_operand.vmem [shape: bf16[32,128], index: 1, kind: input, shape index: {}]   ;;  %s263_s0 = inlined_call_operand.vmem [shape: f32[16,32], index: 0, kind: input, shape index: {}]   ;;  %s264_s3 = inlined_call_operand.vmem [shape: s32[16,1], index: 3, kind: input, shape index: {}]   ;;  %s265_s2 = inlined_call_operand.vmem [shape: f32[1,128], index: 2, kind: input, shape index: {}]   ;;  %s266_s4 = inlined_call_operand.vmem [shape: f32[16,1], index: 4, kind: output, shape index: {0}]   ;;  %s267_s5 = inlined_call_operand.vmem [shape: bf16[16,128], index: 5, kind: output, shape index: {1}]  }
   0x1   :  { %172 = vmatprep.subr.bf16.mxu0 %v199_v0  ;;  %v185_v1 = vld [vmem:[%s262_s1] sm:$0xff]   ;;  %176 = vmatprep.mubr.msk.bf16.mxu0 %vm200_vm0, %v199_v0  ;;  %v186_v2 = vld [vmem:[%s262_s1 + $0x8] sm:$0xff]   ;;  %v111_v22 = vlaneseq  ;;  %vm131_vm4 = vcmask 7168  }
   0x2   :  { %183 = vset.pattern.permute.xlu1 %v201_v3  ;;  %184 = vset.pattern.permute.xlu0 %v201_v3  ;;  %v20_v4 = vld [vmem:[%s263_s0] sm:$0xff]  ;;  %v21_v5 = vld [vmem:[%s263_s0 + $0x8] sm:$0xff] }
   0x3   :  { %173 = vmatpush3.bf16.msra.mxu0 %v185_v1  ;;  %v113_v6 = vld [vmem:[%s264_s3] sm:$0xff]  ;;  %v114_v7 = vld [vmem:[%s264_s3 + $0x8] sm:$0xff]  ;;  %v22_v8 = vpack.c.bf16 %v21_v5, %v20_v4  ;;  %v112_v24 = vand.u32 127, %v111_v22 }
   0x4   :  { %174 = vmatprep.subr.bf16.mxu0 %v199_v0  ;;  %116 = vperm.xlu1 %183, %v113_v6   ;;  %v156_v9 = vld [vmem:[%s265_s2] ss:$0 sm:$0xff] }
   0x7   :  { %175 = vmatpush3.bf16.msra.mxu0 %v186_v2 }
   0x8   :  { %119 = vperm.xlu1 %183, %v114_v7  }
   0xa   :  { %177 = vmatmul.mubr.msk.bf16.vlgmr.msra.gmra.mrb[0].mxu0 %vm46_vm1, %v22_v8 }
  0x83   :  { %v117_v23 = vpop.permute.xlu1 %116 }
  0x84   :  { %vm121_vm2 = vcmp.eq.s32.totalorder %v112_v24, %v117_v23 }
  0x87   :  { %v120_v26 = vpop.permute.xlu1 %119 }
  0x88   :  { %vm122_vm3 = vcmp.eq.s32.totalorder %v112_v24, %v120_v26 }
  0xdd   :  { %v84_v10 = vpop.f32.mrb[0].mxu0 }
  0xde   :  { %v85_v11 = vadd.f32 %v156_v9, %v84_v10  ;;  %v178_v12 = vpop.f32.mrb[1].mxu0 }
  0xdf   :  { %v87_v13 = vpop.f32.mrb[2].mxu0 }
  0xe0   :  { %91 = vmax.xlane.f32.xlu0 %v85_v11  ;;  %v179_v14 = vpop.f32.mrb[3].mxu0  ;;  %v88_v15 = vadd.f32 %v156_v9, %v87_v13  ;;  %v123_v28 = vsel %vm121_vm2, %v85_v11, 0.0 }
  0xe2   :  { %v124_v29 = vsel %vm122_vm3, %v88_v15, 0.0 }
  0xe4   :  { %93 = vmax.xlane.f32.xlu0 %v88_v15 }
 0x16d   :  { %v92_v16 = vpop.xlane.xlu0 %91 }
 0x16e   :  { %v95_v17 = vsub.f32 %v85_v11, %v92_v16 }
 0x170   :  { %v97_v18 = vmul.f32 1.442695, %v95_v17 }
 0x171   :  { %v94_v19 = vpop.xlane.xlu0 %93 }
 0x172   :  { %187 = vpow2.f32 %v97_v18  ;;  %v96_v20 = vsub.f32 %v88_v15, %v94_v19 }
 0x174   :  { %v99_v21 = vmul.f32 1.442695, %v96_v20 }
 0x176   :  { %189 = vpow2.f32 %v99_v21 }
 0x17c   :  { %v188_v25 = vpop.eup %187 }
 0x17d   :  { %101 = vadd.xlane.f32.xlu0 %v188_v25 }
 0x180   :  { %v190_v27 = vpop.eup %189 }
 0x181   :  { %125 = vadd.xlane.f32.xlu0 %v123_v28  ;;  %103 = vadd.xlane.f32.xlu1 %v190_v27 }
 0x185   :  { %127 = vadd.xlane.f32.xlu0 %v124_v29 }
 0x20a   :  { %v102_v30 = vpop.xlane.xlu0 %101 }
 0x20b   :  { %191 = vlog2.f32 %v102_v30 }
 0x20c   :  { %193 = vrcp.f32 %v102_v30 }
 0x20e   :  { %v104_v31 = vpop.xlane.xlu1 %103  ;;  %v126_v34 = vpop.xlane.xlu0 %125 }
 0x20f   :  { %195 = vlog2.f32 %v104_v31 }
 0x210   :  { %197 = vrcp.f32 %v104_v31 }
 0x212   :  { %v128_v45 = vpop.xlane.xlu0 %127 }
 0x215   :  { %v192_v32 = vpop.eup %191 }
 0x216   :  { %v106_v33 = vmul.f32 0.6931472, %v192_v32  ;;  %v194_v35 = vpop.eup %193 }
 0x217   :  { %v135_v41 = vmul.f32 %v194_v35, %v188_v25 }
 0x218   :  { %v109_v36 = vadd.f32 %v106_v33, %v92_v16 }
 0x219   :  { %v196_v37 = vpop.eup %195 }
 0x21a   :  { %v198_v38 = vpop.eup %197  ;;  %v108_v39 = vmul.f32 0.6931472, %v196_v37  ;;  %v129_v40 = vsub.f32 %v109_v36, %v126_v34 }
 0x21b   :  { %v137_v42 = vmul.f32 %v198_v38, %v190_v27 }
 0x21c   :  { %132 = vst.msk [vmem:[%s266_s4] sm:$0xff] %vm131_vm4, %v129_v40  ;;  %v110_v43 = vadd.f32 %v108_v39, %v94_v19 }
 0x21d   :  { %v167_v44 = vpack.c.bf16 %v137_v42, %v135_v41 }
 0x21e   :  { %v130_v46 = vsub.f32 %v110_v43, %v128_v45 }
 0x21f   :  { %168 = vst [vmem:[%s267_s5] sm:$0xff] %v167_v44  }
 0x220   :  { %133 = vst.msk [vmem:[%s266_s4 + $0x8] sm:$0xff] %vm131_vm4, %v130_v46 }

</bundles_post_ra>
